<compile_context>
chip_gen: v5e
topology: v5e:2x2
jax: 0.10.0
libtpu: 0.0.40
codegen_flags: <defaults>
</compile_context>

<pallas_src>
import functools

import jax
import jax.numpy as jnp
from jax.experimental import pallas as pl
from jax.experimental.pallas import tpu as pltpu


def _round_up(x: int, m: int) -> int:
    return (x + m - 1) // m * m


def _pick_tile(dim_p: int, cap: int, prefer_multi: bool = False) -> int:
    """Largest multiple-of-128 divisor of dim_p that is <= cap.

    If prefer_multi, also keep >=2 grid blocks along this axis when dim_p allows it
    (megacore sharding on v7x).
    """
    assert dim_p % 128 == 0
    blocks = dim_p // 128
    limit = max(cap // 128, 1)
    if prefer_multi and blocks >= 2:
        limit = min(limit, blocks // 2)
    limit = max(min(limit, blocks), 1)
    for d in range(limit, 0, -1):
        if blocks % d == 0:
            return d * 128
    return 128


def _select_tiles(M: int, N_p: int, K_p: int):
    tm = min(256, _round_up(M, 8))
    # N tile: lane-dense, divides N_p, keep >=2 N blocks when possible (v7x megacore).
    tn = _pick_tile(N_p, cap=512, prefer_multi=True)
    # K tile: as large as the VMEM budget allows (fewer K steps => fewer f32
    # accumulator read-modify-write passes; helps the single vst slot on v5e).
    budget_bytes = 20 * 1024 * 1024          # double-buffered x + W tiles (f32)
    per_k128 = 2 * (tm + tn) * 128 * 4
    cap_k = max(128, (budget_bytes // per_k128) * 128)
    cap_k = min(cap_k, 4096)
    tk = _pick_tile(K_p, cap=cap_k)
    return tm, tn, tk


def _linear_kernel_acc(x_ref, w_ref, b_ref, o_ref, acc_ref):
    # x_ref: (tm, tk)  w_ref: (tk, tn)  b_ref: (1, tn)  o_ref: (tm, tn)
    k = pl.program_id(2)

    @pl.when(k == 0)
    def _():
        acc_ref[...] = jnp.zeros_like(acc_ref)

    acc_ref[...] += jnp.dot(
        x_ref[...], w_ref[...], preferred_element_type=jnp.float32
    )

    @pl.when(k == pl.num_programs(2) - 1)
    def _():
        o_ref[...] = (acc_ref[...] + b_ref[...].astype(jnp.float32)).astype(o_ref.dtype)


def _linear_kernel_single(x_ref, w_ref, b_ref, o_ref):
    # Whole K in one tile: no scratch round-trip, write dot + bias directly.
    o_ref[...] = (
        jnp.dot(x_ref[...], w_ref[...], preferred_element_type=jnp.float32)
        + b_ref[...].astype(jnp.float32)
    ).astype(o_ref.dtype)


@functools.partial(jax.jit, static_argnames=("tm", "tn", "tk"))
def _linear_pallas(x_p, w_p, b_p, *, tm, tn, tk):
    M_p, K_p = x_p.shape
    _, N_p = w_p.shape
    grid = (M_p // tm, N_p // tn, K_p // tk)

    if grid[2] == 1:
        kernel = _linear_kernel_single
        scratch = []
    else:
        kernel = _linear_kernel_acc
        scratch = [pltpu.VMEM((tm, tn), jnp.float32)]

    return pl.pallas_call(
        kernel,
        out_shape=jax.ShapeDtypeStruct((M_p, N_p), x_p.dtype),
        grid_spec=pltpu.PrefetchScalarGridSpec(
            num_scalar_prefetch=0,
            grid=grid,
            in_specs=[
                pl.BlockSpec((tm, tk), lambda i, j, k: (i, k)),   # x tile
                pl.BlockSpec((tk, tn), lambda i, j, k: (k, j)),   # W tile (pre-transposed)
                pl.BlockSpec((1, tn), lambda i, j, k: (0, j)),    # bias tile
            ],
            out_specs=pl.BlockSpec((tm, tn), lambda i, j, k: (i, j)),
            scratch_shapes=scratch,
        ),
        compiler_params=pltpu.CompilerParams(
            dimension_semantics=("parallel", "parallel", "arbitrary"),
            vmem_limit_bytes=48 * 1024 * 1024,
        ),
    )(x_p, w_p, b_p)


class ValueEncoderPallas:
    """y = x @ W.T + b with W in nn.Linear (out_dim, in_dim) layout.

    W is padded to 128-multiples and pre-transposed to (K_p, N_p) ONCE here, so the
    hot path never re-pads or re-transposes the weight.
    """

    def __init__(self, weight, bias):
        N, K = weight.shape
        assert bias.shape == (N,)
        self.N, self.K = N, K
        self.N_p = _round_up(N, 128)
        self.K_p = _round_up(K, 128)

        w = weight
        if self.N_p != N or self.K_p != K:
            w = jnp.pad(w, ((0, self.N_p - N), (0, self.K_p - K)))
        self.w_t = jnp.asarray(w.T)                                   # (K_p, N_p)
        b = bias if self.N_p == N else jnp.pad(bias, (0, self.N_p - N))
        self.b = b.reshape(1, self.N_p).astype(jnp.float32)           # (1, N_p)
        jax.block_until_ready((self.w_t, self.b))

    def __call__(self, x):
        lead_shape = x.shape[:-1]
        K = x.shape[-1]
        assert K == self.K, "input feature dim mismatch"
        x2 = x.reshape(-1, K)
        M = x2.shape[0]

        tm, tn, tk = _select_tiles(M, self.N_p, self.K_p)
        M_p = _round_up(M, tm)

        x_p = x2
        if M_p != M or self.K_p != K:
            x_p = jnp.pad(x2, ((0, M_p - M), (0, self.K_p - K)))

        out_p = _linear_pallas(x_p, self.w_t, self.b, tm=tm, tn=tn, tk=tk)

        out = out_p
        if M_p != M or self.N_p != self.N:
            out = out_p[:M, : self.N]
        return out.reshape(*lead_shape, self.N)


if __name__ == "__main__":
    key = jax.random.PRNGKey(0)

    # --- Small shapes consistent with the module: batch=2, input_dim=32, output_dim=64 ---
    batch, input_dim, output_dim = 2, 32, 64
    kx, kw, kb, key = jax.random.split(key, 4)

    bound = 1.0 / (input_dim ** 0.5)
    weight = jax.random.uniform(kw, (output_dim, input_dim), jnp.float32, -bound, bound)
    bias = jax.random.uniform(kb, (output_dim,), jnp.float32, -bound, bound)
    x = jax.random.normal(kx, (batch, input_dim), jnp.float32)

    enc = ValueEncoderPallas(weight, bias)
    y = enc(x)
    jax.block_until_ready(y)
    y_ref = x @ weight.T + bias
    assert y.shape == (batch, output_dim)
    assert jnp.allclose(y, y_ref, atol=1e-5), "mismatch vs reference (small)"

    # --- K=640: exercises the divisor-aware tiling (tk=640, zero padded-W traffic) ---
    b2, d_in2, d_out2 = 16, 640, 256
    k1, k2, k3, key = jax.random.split(key, 4)
    bound2 = 1.0 / (d_in2 ** 0.5)
    w2 = jax.random.uniform(k2, (d_out2, d_in2), jnp.float32, -bound2, bound2)
    bb2 = jax.random.uniform(k3, (d_out2,), jnp.float32, -bound2, bound2)
    x2 = jax.random.normal(k1, (b2, d_in2), jnp.float32)

    enc2 = ValueEncoderPallas(w2, bb2)
    y2 = enc2(x2)
    jax.block_until_ready(y2)
    y2_ref = x2 @ w2.T + bb2
    assert y2.shape == (b2, d_out2)
    assert jnp.allclose(y2, y2_ref, atol=1e-4), "mismatch vs reference (K=640)"

    # --- Large K: exercises the multi-step K accumulation (f32 scratch) path ---
    b3, d_in3, d_out3 = 4, 8192, 512
    k4, k5, k6, key = jax.random.split(key, 4)
    bound3 = 1.0 / (d_in3 ** 0.5)
    w3 = jax.random.uniform(k5, (d_out3, d_in3), jnp.float32, -bound3, bound3)
    bb3 = jax.random.uniform(k6, (d_out3,), jnp.float32, -bound3, bound3)
    x3 = jax.random.normal(k4, (b3, d_in3), jnp.float32)

    enc3 = ValueEncoderPallas(w3, bb3)
    y3 = enc3(x3)
    jax.block_until_ready(y3)
    y3_ref = x3 @ w3.T + bb3
    assert y3.shape == (b3, d_out3)
    assert jnp.allclose(y3, y3_ref, atol=1e-3), "mismatch vs reference (multi-K)"

    print("KERNEL_OK")
</pallas_src>

<mosaic_0001>
module attributes {stable_mosaic.version = 11 : i64} {
  func.func @_linear_kernel_single(%arg0: i32, %arg1: i32, %arg2: i32, %arg3: memref<8x128xf32, #tpu.memory_space<vmem>>, %arg4: memref<128x128xf32, #tpu.memory_space<vmem>>, %arg5: memref<1x128xf32, #tpu.memory_space<vmem>>, %arg6: memref<8x128xf32, #tpu.memory_space<vmem>>) attributes {dimension_semantics = [#tpu.dimension_semantics<parallel>, #tpu.dimension_semantics<parallel>, #tpu.dimension_semantics<arbitrary>], iteration_bounds = array<i64: 1, 1, 1>, scalar_prefetch = 0 : i64, scratch_operands = 0 : i64, tpu.core_type = #tpu.core_type<tc>, window_params = [{transform_indices = @transform_0, window_bounds = array<i64: 8, 128>}, {transform_indices = @transform_1, window_bounds = array<i64: 128, 128>}, {transform_indices = @transform_2, window_bounds = array<i64: 1, 128>}, {transform_indices = @transform_3, window_bounds = array<i64: 8, 128>}]} {
    %c0 = arith.constant 0 : index
    %c0_0 = arith.constant 0 : index
    %0 = vector.load %arg3[%c0, %c0_0] : memref<8x128xf32, #tpu.memory_space<vmem>>, vector<8x128xf32>
    %c0_1 = arith.constant 0 : index
    %c0_2 = arith.constant 0 : index
    %1 = vector.load %arg4[%c0_1, %c0_2] : memref<128x128xf32, #tpu.memory_space<vmem>>, vector<128x128xf32>
    %cst = arith.constant dense<0.000000e+00> : vector<8x128xf32>
    %2 = tpu.matmul %0, %1, %cst {dimension_numbers = #tpu.dot_dimension_numbers<[1], [0], [0], [1], [0, 0, 1, 1], [], []>} : vector<8x128xf32>, vector<128x128xf32>, vector<8x128xf32> -> vector<8x128xf32>
    %c0_3 = arith.constant 0 : index
    %c0_4 = arith.constant 0 : index
    %3 = vector.load %arg5[%c0_3, %c0_4] : memref<1x128xf32, #tpu.memory_space<vmem>>, vector<1x128xf32>
    %4 = vector.broadcast %3 : vector<1x128xf32> to vector<8x128xf32>
    %5 = arith.addf %2, %4 : vector<8x128xf32>
    %c0_5 = arith.constant 0 : index
    %c0_6 = arith.constant 0 : index
    %6 = vector.load %arg6[%c0_5, %c0_6] : memref<8x128xf32, #tpu.memory_space<vmem>>, vector<8x128xf32>
    tpu.vector_store %arg6[%c0_5, %c0_6], %5 {strides = array<i32>} : memref<8x128xf32, #tpu.memory_space<vmem>>, vector<8x128xf32>,
    return
  }
  func.func @transform_0(%arg0: i32, %arg1: i32, %arg2: i32) -> (i32, i32) {
    %c0_i32 = arith.constant 0 : i32
    return %arg0, %arg2 : i32, i32
  }
  func.func @transform_1(%arg0: i32, %arg1: i32, %arg2: i32) -> (i32, i32) {
    %c0_i32 = arith.constant 0 : i32
    return %arg2, %arg1 : i32, i32
  }
  func.func @transform_2(%arg0: i32, %arg1: i32, %arg2: i32) -> (i32, i32) {
    %c0_i32 = arith.constant 0 : i32
    %c0_i32_0 = arith.constant 0 : i32
    return %c0_i32, %arg1 : i32, i32
  }
  func.func @transform_3(%arg0: i32, %arg1: i32, %arg2: i32) -> (i32, i32) {
    %c0_i32 = arith.constant 0 : i32
    return %arg0, %arg1 : i32, i32
  }
}

</mosaic_0001>

<bundles_post_ra>
// kernel: _linear_pallas.1
= control target key start
LH: loop header
LB: loop body
LE: loop exit
PB: predicated region body
PF: predicated region fallthrough
CT: control target
= control target key end

     0   :  { %8 = vsyncpa [#allocation3], 0  ;;  %s226_s0 = inlined_call_operand.hbm [shape: f32[8,128], index: 0, kind: input, shape index: {}]   ;;  %s227_s1 = inlined_call_operand.hbm [shape: f32[128,128], index: 1, kind: input, shape index: {}]   ;;  %s228_s2 = inlined_call_operand.vmem [shape: f32[1,128], index: 2, kind: input, shape index: {}]   ;;  %s229_s3 = inlined_call_operand.hbm [shape: f32[8,128], index: 3, kind: output, shape index: {}]  }
   0x1   :  { %9 = vsyncpa [#allocation6], 0 }
   0x2   :  { %10 = vsyncpa [#allocation4], 0  ;;  %s16_s14 = sshll.u32 %s226_s0, 4  ;;  %s189_s15 = smov [#allocation2]   ;;  %s17_s14 = int_to_ptr.hbm [resolvable:$true] %s16_s14 }
   0x3   :  { %s18_s16 = sshll.u32 %s189_s15, 4  ;;  %s26_s19 = sshll.u32 %s227_s1, 4  ;;  %s19_s16 = int_to_ptr.vmem [resolvable:$true] %s18_s16  ;;  %s27_s19 = int_to_ptr.hbm [resolvable:$true] %s26_s19 }
   0x4   :  { %21 = dma.hbm_to_vmem [thread:$0]  %s17_s14, 128, %s19_s16, [#allocation3]  }
   0x5   :  { %s190_s20 = smov [#allocation5]   ;;  %s191_s22 = smov 128  }
   0x6   :  { %s28_s21 = sshll.u32 %s190_s20, 4  ;;  %s192_s23 = smov 8   ;;  %s29_s21 = int_to_ptr.vmem [resolvable:$true] %s28_s21 }
   0x7   :  { %34 = dma.hbm_to_vmem [thread:$0]  %s27_s19, 2048, %s29_s21, [#allocation6], %s191_s22, %s191_s22, %s192_s23  }
   0x8   :  { %183 = dma.done.wait [#allocation3], 128  }
   0x9   :  { %184 = vsyncadd [#allocation3], 4294967168 }
   0xa   :  { %185 = dma.done.wait [#allocation6], 2048  }
   0xb   :  { %186 = vsyncadd [#allocation6], 4294965248  ;;  %v61_v0 = vld [vmem:[#allocation5 + $0x78] sm:$0xff]  ;;  %v60_v1 = vld [vmem:[#allocation5 + $0x70] sm:$0xff]  ;;  %s193_s24 = smov [#allocation7]   ;;  %s94_s28 = sshll.u32 %s229_s3, 4  ;;  %s95_s28 = int_to_ptr.hbm [resolvable:$true] %s94_s28 }
   0xc   :  { %66 = vmatpush.msra.mxu0 %v61_v0  ;;  %v59_v2 = vld [vmem:[#allocation5 + $0x68] sm:$0xff]  ;;  %v58_v3 = vld [vmem:[#allocation5 + $0x60] sm:$0xff]  ;;  %v57_v4 = vld [vmem:[#allocation5 + $0x58] sm:$0xff]  ;;  %s92_s25 = sshll.u32 %s193_s24, 4  ;;  %s93_s25 = int_to_ptr.vmem [resolvable:$true] %s92_s25 }
   0xd   :  { %v56_v5 = vld [vmem:[#allocation5 + $0x50] sm:$0xff]  ;;  %v55_v6 = vld [vmem:[#allocation5 + $0x48] sm:$0xff]  ;;  %v54_v7 = vld [vmem:[#allocation5 + $0x40] sm:$0xff] }
   0xe   :  { %67 = vmatpush.msra.mxu0 %v60_v1  ;;  %v53_v8 = vld [vmem:[#allocation5 + $0x38] sm:$0xff]  ;;  %v52_v9 = vld [vmem:[#allocation5 + $0x30] sm:$0xff]  ;;  %v51_v10 = vld [vmem:[#allocation5 + $0x28] sm:$0xff] }
   0xf   :  { %v50_v11 = vld [vmem:[#allocation5 + $0x20] sm:$0xff]  ;;  %v49_v12 = vld [vmem:[#allocation5 + $0x18] sm:$0xff]  ;;  %v48_v13 = vld [vmem:[#allocation5 + $0x10] sm:$0xff] }
  0x10   :  { %68 = vmatpush.msra.mxu0 %v59_v2  ;;  %v47_v14 = vld [vmem:[#allocation5 + $0x8] sm:$0xff]  ;;  %v46_v15 = vld [vmem:[#allocation5] sm:$0xff]  ;;  %v45_v16 = vld [vmem:[#allocation2] sm:$0xff] }
  0x11   :  { %v110_v17 = vld [vmem:[%s228_s2] ss:$0 sm:$0xff] }
  0x12   :  { %69 = vmatpush.msra.mxu0 %v58_v3 }
  0x14   :  { %70 = vmatpush.msra.mxu0 %v57_v4 }
  0x16   :  { %71 = vmatpush.msra.mxu0 %v56_v5 }
  0x18   :  { %72 = vmatpush.msra.mxu0 %v55_v6 }
  0x1a   :  { %73 = vmatpush.msra.mxu0 %v54_v7 }
  0x1c   :  { %74 = vmatpush.msra.mxu0 %v53_v8 }
  0x1e   :  { %75 = vmatpush.msra.mxu0 %v52_v9 }
  0x20   :  { %76 = vmatpush.msra.mxu0 %v51_v10 }
  0x22   :  { %77 = vmatpush.msra.mxu0 %v50_v11 }
  0x24   :  { %78 = vmatpush.msra.mxu0 %v49_v12 }
  0x26   :  { %79 = vmatpush.msra.mxu0 %v48_v13 }
  0x28   :  { %80 = vmatpush.msra.mxu0 %v47_v14 }
  0x2a   :  { %81 = vmatpush.msra.mxu0 %v46_v15 }
  0x2b   :  { %82 = vmatmul.f32.vlgmr.msra.gmra.mxu0 %v45_v16 }
  0xa8   :  { %v83_v18 = vpop.f32.mrf.mxu0 }
  0xa9   :  { %v84_v19 = vadd.f32 %v110_v17, %v83_v18 }
  0xab   :  { %86 = vst [vmem:[#allocation7] sm:$0xff] %v84_v19 }
  0xac   :  { %97 = dma.vmem_to_hbm [thread:$0]  %s93_s25, 128, %s95_s28, [#allocation4]  }
  0xad   :  { %187 = dma.done.wait [#allocation4], 128  }
  0xae   :  { %188 = vsyncadd [#allocation4], 4294967168 }
  0xaf   :  { %102 = vsyncpa [#allocation3], 1 }
  0xb0   :  { %103 = vsyncpa [#allocation6], 1 }
  0xb1   :  { %104 = vsyncpa [#allocation4], 1 }

</bundles_post_ra>
